<compile_context>
chip_gen: v7x
topology: tpu7x:2x2x1
jax: 0.10.0
libtpu: 0.0.40
codegen_flags: <defaults>
</compile_context>

<pallas_src>
import functools
import math

import jax
import jax.numpy as jnp
from jax import lax
from jax.experimental import pallas as pl
from jax.experimental.pallas import tpu as pltpu


def _pe_kernel(tab_ref, o_ref, *, pack):
    # tab_ref: (3, width) f32 per-column constants
    #   row 0: inv_freq[c] = exp(-(2*((c % d_model)//2)) * ln(10000)/d_model)
    #   row 1: pos_off[c]  = c // d_model     (position offset inside a packed row)
    #   row 2: phase[c]    = (pi/2) * ((c % d_model) % 2)   (turns sin into cos)
    # o_ref: (row_tile, width) — packed rows of the PE table.
    rows, width = o_ref.shape
    inv_freq = tab_ref[0:1, :]          # (1, width)
    pos_off = tab_ref[1:2, :]           # (1, width)
    phase = tab_ref[2:3, :]             # (1, width)

    base = (pl.program_id(0) * rows * pack).astype(jnp.float32)
    r = lax.broadcasted_iota(jnp.int32, (rows, width), 0).astype(jnp.float32)
    # Global position per element; exact in f32 (positions <= max_len << 2^24).
    pos = base + r * float(pack) + pos_off
    o_ref[...] = jnp.sin(pos * inv_freq + phase)


def _build_tab(d_model, pack):
    width = pack * d_model
    c = jnp.arange(width, dtype=jnp.int32)
    j = c % d_model
    inv_freq = jnp.exp(
        ((j // 2) * 2).astype(jnp.float32) * (-(math.log(10000.0) / d_model))
    )
    pos_off = (c // d_model).astype(jnp.float32)
    phase = (j % 2).astype(jnp.float32) * (math.pi / 2.0)
    return jnp.stack([inv_freq, pos_off, phase], axis=0)  # (3, width) f32


def _pe_dense(L, d_model):
    """Plain-jnp sinusoid (identical math to the PyTorch buffer build)."""
    position = jnp.arange(L, dtype=jnp.float32)[:, None]
    div_term = jnp.exp(
        jnp.arange(0, d_model, 2, dtype=jnp.float32) * -(math.log(10000.0) / d_model)
    )
    pe = jnp.zeros((L, d_model), dtype=jnp.float32)
    pe = pe.at[:, 0::2].set(jnp.sin(position * div_term))
    pe = pe.at[:, 1::2].set(jnp.cos(position * div_term))
    return pe[None]


def positional_embedding(x, d_model, max_len=5000, *, row_tile_max=1024,
                         force_kernel=False):
    """Forward of FEDformer PositionalEmbedding: returns pe[:, :x.shape[1]]."""
    L = x.shape[1]
    assert L <= max_len, "seq_len exceeds max_len"
    assert d_model % 2 == 0, "d_model must be even (as in the PyTorch module)"

    # Fast path: tiny problems are cheaper as a fused jnp expression than a
    # pallas_call launch.
    if not force_kernel and L * d_model < 65536:
        return _pe_dense(L, d_model)

    # Lane-dense packing: `pack` consecutive positions per output row so that
    # width = pack * d_model = lcm(d_model, 128) is always a multiple of 128.
    pack = 128 // math.gcd(d_model, 128)
    width = pack * d_model

    rows = -(-L // pack)                     # packed rows needed
    rows8 = ((rows + 7) // 8) * 8            # sublane alignment

    # Tile sizing: as big as possible (fewer grid steps), capped so a
    # double-buffered output tile stays well inside the scoped VMEM budget on
    # every generation (v7x: 64 MiB physical / 32 MiB scoped default).
    bytes_per_row = width * 4
    tile_budget = 4 * 1024 * 1024
    cap = max(8, (tile_budget // bytes_per_row) // 8 * 8)
    row_tile = min(row_tile_max, rows8, cap)
    grid = -(-rows8 // row_tile)
    if grid > 1:
        # Force an even, balanced grid so v7x's two TensorCores ("parallel"
        # semantics) get equal work; v5e/v6e are unaffected.
        if grid % 2 == 1:
            grid += 1
        row_tile = ((-(-rows8 // grid)) + 7) // 8 * 8
        grid = -(-rows8 // row_tile)
    else:
        row_tile = rows8                     # single step: one writeback, done
    rows_pad = grid * row_tile

    tab = _build_tab(d_model, pack)

    elems = rows_pad * width
    cost = pl.CostEstimate(
        flops=3 * elems,
        transcendentals=elems,
        bytes_accessed=4 * elems + 3 * width * 4,
    )

    out = pl.pallas_call(
        functools.partial(_pe_kernel, pack=pack),
        out_shape=jax.ShapeDtypeStruct((rows_pad, width), jnp.float32),
        grid_spec=pltpu.PrefetchScalarGridSpec(
            num_scalar_prefetch=0,
            grid=(grid,),
            in_specs=[
                pl.BlockSpec((3, width), lambda i: (0, 0)),   # tiny, grid-resident
            ],
            out_specs=pl.BlockSpec((row_tile, width), lambda i: (i, 0)),
        ),
        compiler_params=pltpu.CompilerParams(
            dimension_semantics=("parallel",),   # megacore-shardable on v7x
        ),
        cost_estimate=cost,
    )(tab)

    # Free row-major un-packing, then drop pad rows.
    pe = out.reshape(rows_pad * pack, d_model)[:L]
    return pe[None]  # (1, L, d_model) == self.pe[:, :x.size(1)]


if __name__ == "__main__":
    key = jax.random.PRNGKey(0)

    # --- Small shape (module-consistent): batch=2, seq=8, hidden=32 ---------
    d_model = 32
    B, L = 2, 8
    # Only x.shape[1] matters for the forward, matching the PyTorch module.
    x = jax.random.normal(key, (B, L, d_model), dtype=jnp.float32)
    y_ref = _pe_dense(L, d_model)

    # Fast path (default behaviour at tiny sizes).
    y_fast = jax.block_until_ready(positional_embedding(x, d_model=d_model))
    assert y_fast.shape == (1, L, d_model)
    assert jnp.allclose(y_fast, y_ref, atol=1e-5, rtol=1e-5)

    # Kernel path at the same small shape (single grid step, pack=4, width=128).
    y_k = jax.block_until_ready(
        positional_embedding(x, d_model=d_model, force_kernel=True)
    )
    assert y_k.shape == (1, L, d_model)
    assert jnp.allclose(y_k, y_ref, atol=1e-4, rtol=1e-5)

    # Kernel path with a multi-step, even grid (exercises "parallel" tiling).
    L2 = 2048
    x2 = jnp.zeros((1, L2, d_model), dtype=jnp.float32)
    y2 = jax.block_until_ready(
        positional_embedding(x2, d_model=d_model, row_tile_max=128,
                             force_kernel=True)
    )
    assert y2.shape == (1, L2, d_model)
    assert jnp.allclose(y2, _pe_dense(L2, d_model), atol=2e-3, rtol=1e-5)

    # Kernel path where d_model does not divide 128 (gcd packing: pack=4, width=384).
    d3, L3 = 96, 600
    x3 = jnp.zeros((1, L3, d3), dtype=jnp.float32)
    y3 = jax.block_until_ready(
        positional_embedding(x3, d_model=d3, force_kernel=True)
    )
    assert y3.shape == (1, L3, d3)
    assert jnp.allclose(y3, _pe_dense(L3, d3), atol=1e-3, rtol=1e-5)

    print("KERNEL_OK")
</pallas_src>

<mosaic_0001>
module attributes {stable_mosaic.version = 11 : i64} {
  func.func @_pe_kernel(%arg0: i32, %arg1: memref<3x128xf32, #tpu.memory_space<vmem>>, %arg2: memref<8x128xf32, #tpu.memory_space<vmem>>) attributes {dimension_semantics = [#tpu.dimension_semantics<parallel>], iteration_bounds = array<i64: 1>, scalar_prefetch = 0 : i64, scratch_operands = 0 : i64, tpu.core_type = #tpu.core_type<tc>, window_params = [{pipeline_mode = #tpu.pipeline_mode<synchronous>, transform_indices = @transform_0, window_bounds = array<i64: 3, 128>}, {transform_indices = @transform_1, window_bounds = array<i64: 8, 128>}]} {
    %c0 = arith.constant 0 : index
    %c0_0 = arith.constant 0 : index
    %0 = vector.load %arg1[%c0, %c0_0] : memref<3x128xf32, #tpu.memory_space<vmem>>, vector<1x128xf32>
    %c1 = arith.constant 1 : index
    %c0_1 = arith.constant 0 : index
    %1 = vector.load %arg1[%c1, %c0_1] : memref<3x128xf32, #tpu.memory_space<vmem>>, vector<1x128xf32>
    %c2 = arith.constant 2 : index
    %c0_2 = arith.constant 0 : index
    %2 = vector.load %arg1[%c2, %c0_2] : memref<3x128xf32, #tpu.memory_space<vmem>>, vector<1x128xf32>
    %c8_i32 = arith.constant 8 : i32
    %3 = arith.muli %arg0, %c8_i32 : i32
    %c4_i32 = arith.constant 4 : i32
    %4 = arith.muli %3, %c4_i32 : i32
    %5 = arith.sitofp %4 : i32 to f32
    %6 = tpu.iota {dimensions = array<i32: 0>} : vector<8x128xi32>
    %7 = arith.sitofp %6 : vector<8x128xi32> to vector<8x128xf32>
    %cst = arith.constant 4.000000e+00 : f32
    %8 = vector.broadcast %cst : f32 to vector<8x128xf32>
    %9 = arith.mulf %7, %8 : vector<8x128xf32>
    %10 = vector.broadcast %5 : f32 to vector<8x128xf32>
    %11 = arith.addf %10, %9 : vector<8x128xf32>
    %12 = vector.broadcast %1 : vector<1x128xf32> to vector<8x128xf32>
    %13 = arith.addf %11, %12 : vector<8x128xf32>
    %14 = vector.broadcast %0 : vector<1x128xf32> to vector<8x128xf32>
    %15 = arith.mulf %13, %14 : vector<8x128xf32>
    %16 = vector.broadcast %2 : vector<1x128xf32> to vector<8x128xf32>
    %17 = arith.addf %15, %16 : vector<8x128xf32>
    %18 = math.sin %17 : vector<8x128xf32>
    %c0_3 = arith.constant 0 : index
    %c0_4 = arith.constant 0 : index
    %19 = vector.load %arg2[%c0_3, %c0_4] : memref<8x128xf32, #tpu.memory_space<vmem>>, vector<8x128xf32>
    tpu.vector_store %arg2[%c0_3, %c0_4], %18 {strides = array<i32>} : memref<8x128xf32, #tpu.memory_space<vmem>>, vector<8x128xf32>,
    return
  }
  func.func @transform_0(%arg0: i32) -> (i32, i32) {
    %c0_i32 = arith.constant 0 : i32
    %c0_i32_0 = arith.constant 0 : i32
    %c0_i32_1 = arith.constant 0 : i32
    return %c0_i32, %c0_i32_0 : i32, i32
  }
  func.func @transform_1(%arg0: i32) -> (i32, i32) {
    %c0_i32 = arith.constant 0 : i32
    %c0_i32_0 = arith.constant 0 : i32
    return %arg0, %c0_i32 : i32, i32
  }
}

</mosaic_0001>

<bundles_post_ra>
// kernel: tpu_custom_call.1
= control target key start
LH: loop header
LB: loop body
LE: loop exit
PB: predicated region body
PF: predicated region fallthrough
CT: control target
= control target key end

     0   :  { %6 = vsyncpa [#allocation3], 0  ;;  %s301_s0 = inlined_call_operand.hbm [shape: f32[3,128], index: 0, kind: input, shape index: {}]   ;;  %s302_s1 = inlined_call_operand.hbm [shape: f32[8,128], index: 1, kind: output, shape index: {}]  }
   0x1   :  { %7 = vsyncpa [#allocation4], 0  ;;  %s238_s6 = smov [#allocation2]   ;;  %s190_s10 = scalar_lea.hbm %s301_s0, 64 }
   0x2   :  { %s14_s7 = sshll.u32 %s238_s6, 4  ;;  %p191_p0 = scmp.ne.s32.totalorder %s301_s0, %s190_s10  ;;  %s15_s7 = int_to_ptr.vmem [resolvable:$true] %s14_s7 }
   0x3   :  { %p194_p1 = scmp.lt.u32.totalorder %s190_s10, %s301_s0 }
   0x5   :  { %p196_p2 = pnand %p194_p1, %p191_p0 }
   0x7   :  { %199 = shalt.err (!%p196_p2)
}
   0x8   :  { %s200_s15 = scalar_lea.vmem %s15_s7, 64  ;;  %p205_p4 = scmp.lt.s32.totalorder %s15_s7, %s15_s7 }
   0x9   :  { %p201_p3 = scmp.ne.s32.totalorder %s15_s7, %s200_s15  ;;  %p206_p5 = scmp.lt.s32.totalorder %s200_s15, %s200_s15 }
   0xb   :  { %p207_p6 = por %p206_p5, %p205_p4 }
   0xd   :  { %p208_p7 = pnand %p207_p6, %p201_p3 }
   0xf   :  { %211 = shalt.err (!%p208_p7)
}
  0x10   :  { %17 = dma.hbm_to_vmem [thread:$0]  %s301_s0, 64, %s15_s7, [#allocation3]  }
  0x11   :  { %234 = dma.done.wait [#allocation3], 64  }
  0x12   :  { %235 = vsyncadd [#allocation3], 4294967232  ;;  %v26_v0 = vlaneseq  ;;  %v168_v4 = vld [vmem:[#allocation2] ss:$0 sm:$0xff]  ;;  %v167_v5 = vld [vmem:[#allocation2 + $0x1] ss:$0 sm:$0xff] }
  0x13   :  { %v169_v7 = vld [vmem:[#allocation2 + $0x2] ss:$0 sm:$0xff]  ;;  %v239_v21 = vmov 683565275   ;;  %v240_v23 = vmov 2475754826  }
  0x14   :  { %v27_v1 = vshrl.u32 %v26_v0, 7  ;;  %v241_v25 = vmov 2131351028   ;;  %v242_v27 = vmov 2102212464   ;;  %s245_s0 = smov [#allocation5]  }
  0x15   :  { %v243_v29 = vmov 920167782   ;;  %v244_v36 = vmov 1326507024   ;;  %s158_s18 = sshll.u32 %s245_s0, 4  ;;  %s159_s18 = int_to_ptr.vmem [resolvable:$true] %s158_s18 }
  0x16   :  { %v28_v2 = vcvt.s32.f32 %v27_v1  ;;  %s212_s19 = scalar_lea.vmem %s159_s18, 128  ;;  %p217_p9 = scmp.lt.s32.totalorder %s159_s18, %s159_s18 }
  0x17   :  { %p213_p8 = scmp.ne.s32.totalorder %s159_s18, %s212_s19  ;;  %p218_p10 = scmp.lt.s32.totalorder %s212_s19, %s212_s19 }
  0x18   :  { %v29_v3 = vmul.f32 4.0, %v28_v2 }
  0x19   :  { %p219_p11 = por %p218_p10, %p217_p9 }
  0x1a   :  { %v36_v6 = vadd.f32 %v167_v5, %v29_v3 }
  0x1b   :  { %p220_p12 = pnand %p219_p11, %p213_p8 }
  0x1c   :  { %v41_v8 = vmul.f32 %v168_v4, %v36_v6 }
  0x1e   :  { %v268_v9 = vadd.f32 %v169_v7, %v41_v8 }
  0x20   :  { %v50_v10 = vand.u32 2139095040, %v268_v9  ;;  %v47_v12 = vand.u32 2147483647, %v268_v9  ;;  %vm49_vm7 = vcmp.lt.s32.totalorder %v268_v9, 0  ;;  %vm139_vm12 = vweird.f32 %v268_v9 }
  0x22   :  { %v51_v11 = vshrl.u32 %v50_v10, 23  ;;  %v54_v15 = vand.u32 8388607, %v47_v12  ;;  %vm48_vm8 = vcmp.le.f32.partialorder %v47_v12, 0.7853982 }
  0x24   :  { %v170_v13 = vadd.s32 4294967169, %v51_v11  ;;  %v55_v18 = vor.u32 8388608, %v54_v15 }
  0x26   :  { %v57_v14 = vadd.s32 1, %v170_v13  ;;  %v95_v38 = vshll.u32 %v55_v18, 8 }
  0x28   :  { %vm58_vm0 = vcmp.gt.s32.totalorder %v57_v14, 0 }
  0x29   :  { %v59_v16 = vsel %vm58_vm0, %v57_v14, 0 }
  0x2a   :  { %v61_v17 = vand.u32 31, %v59_v16  ;;  %v60_v19 = vshrl.u32 %v59_v16, 5 }
  0x2c   :  { %v62_v20 = vsub.s32 32, %v61_v17  ;;  %v64_v22 = vshll.u32 %v239_v21, %v61_v17  ;;  %v67_v24 = vshll.u32 %v240_v23, %v61_v17  ;;  %v70_v26 = vshll.u32 %v241_v25, %v61_v17 }
  0x2d   :  { %v73_v28 = vshll.u32 %v242_v27, %v61_v17  ;;  %v76_v30 = vshll.u32 %v243_v29, %v61_v17  ;;  %vm79_vm1 = vcmp.lt.s32.totalorder %v60_v19, 1  ;;  %vm82_vm2 = vcmp.lt.s32.totalorder %v60_v19, 4 }
  0x2e   :  { %v63_v31 = vshrl.u32 %v239_v21, %v62_v20  ;;  %v65_v32 = vshrl.u32 %v240_v23, %v62_v20  ;;  %v68_v33 = vshrl.u32 %v241_v25, %v62_v20  ;;  %v71_v34 = vshrl.u32 %v242_v27, %v62_v20 }
  0x2f   :  { %v74_v35 = vshrl.u32 %v243_v29, %v62_v20  ;;  %v77_v37 = vshrl.u32 %v244_v36, %v62_v20  ;;  %vm80_vm3 = vcmp.lt.s32.totalorder %v60_v19, 2  ;;  %vm81_vm4 = vcmp.lt.s32.totalorder %v60_v19, 3 }
  0x30   :  { %v66_v39 = vor.u32 %v65_v32, %v64_v22  ;;  %v69_v40 = vor.u32 %v68_v33, %v67_v24  ;;  %v72_v41 = vor.u32 %v71_v34, %v70_v26 }
  0x31   :  { %v75_v42 = vor.u32 %v74_v35, %v73_v28  ;;  %v78_v43 = vor.u32 %v77_v37, %v76_v30 }
  0x32   :  { %v83_v44 = vsel %vm79_vm1, %v63_v31, %v66_v39  ;;  %v84_v45 = vsel %vm82_vm2, %v72_v41, 2102212464  ;;  %v87_v46 = vsel %vm79_vm1, %v66_v39, %v69_v40  ;;  %v91_v47 = vsel %vm79_vm1, %v69_v40, %v72_v41 }
  0x33   :  { %v85_v48 = vsel %vm81_vm4, %v69_v40, %v84_v45  ;;  %v88_v49 = vsel %vm82_vm2, %v75_v42, 920167782  ;;  %v92_v50 = vsel %vm82_vm2, %v78_v43, 1326507024 }
  0x34   :  { %v89_v51 = vsel %vm81_vm4, %v72_v41, %v88_v49  ;;  %v93_v52 = vsel %vm81_vm4, %v75_v42, %v92_v50  ;;  %v86_v53 = vsel %vm80_vm3, %v83_v44, %v85_v48 }
  0x35   :  { %v90_v54 = vsel %vm80_vm3, %v87_v46, %v89_v51  ;;  %v94_v55 = vsel %vm80_vm3, %v91_v47, %v93_v52  ;;  %v102_v60 = vmul.u32 %v95_v38, %v86_v53 }
  0x36   :  { %v274_v56 = vmul.u32.u64.low %v95_v38, %v94_v55  ;;  %v275_v57 = vmul.u32.u64.high %v95_v38, %v94_v55, %v274_v56  ;;  %v277_v58 = vmul.u32.u64.low %v95_v38, %v90_v54  ;;  %v278_v59 = vmul.u32.u64.high %v95_v38, %v90_v54, %v277_v58 }
  0x38   :  { %vm104_vm5 = vc.u32 %v275_v57, %v277_v58  ;;  %v105_v61 = vadd.s32 1, %v278_v59  ;;  %v103_v8 = vadd.s32 %v277_v58, %v275_v57 }
  0x3a   :  { %v106_v62 = vsel %vm104_vm5, %v105_v61, %v278_v59 }
  0x3b   :  { %v107_v63 = vadd.s32 %v106_v62, %v102_v60 }
  0x3d   :  { %v108_v0 = vadd.s32 536870912, %v107_v63 }
  0x3f   :  { %v109_v1 = vshrl.u32 %v108_v0, 30 }
  0x41   :  { %v110_v2 = vshll.u32 %v109_v1, 30  ;;  %v133_v22 = vsub.s32 4, %v109_v1 }
  0x43   :  { %v111_v3 = vsub.s32 %v107_v63, %v110_v2  ;;  %v134_v25 = vsel %vm49_vm7, %v133_v22, %v109_v1 }
  0x44   :  { %v136_v28 = vsel %vm48_vm8, 0, %v134_v25 }
  0x45   :  { %v113_v4 = vsub.s32 0, %v111_v3  ;;  %v140_v29 = vadd.s32 3, %v136_v28 }
  0x47   :  { %v171_v5 = vmin.u32 %v113_v4, %v111_v3  ;;  %v141_v30 = vand.u32 3, %v140_v29 }
  0x49   :  { %v115_v6 = vclz %v171_v5  ;;  %vm146_vm9 = vcmp.eq.s32.totalorder %v141_v30, 2  ;;  %vm143_vm10 = vcmp.eq.s32.totalorder %v141_v30, 0  ;;  %vm142_vm11 = vcmp.lt.s32.totalorder %v141_v30, 2 }
  0x4b   :  { %v172_v7 = vadd.s32 4294967294, %v115_v6 }
  0x4d   :  { %vm173_vm6 = vcmp.lt.s32.totalorder %v172_v7, 0 }
  0x4e   :  { %v118_v10 = vsel %vm173_vm6, 0, %v172_v7 }
  0x4f   :  { %v119_v11 = vsub.s32 32, %v118_v10  ;;  %v120_v13 = vshll.u32 %v111_v3, %v118_v10  ;;  %v123_v14 = vsub.s32 4294967266, %v118_v10 }
  0x51   :  { %v121_v15 = vshrl.u32 %v103_v8, %v119_v11  ;;  %v124_v16 = vadd.s32 127, %v123_v14 }
  0x53   :  { %v122_v17 = vor.u32 %v121_v15, %v120_v13  ;;  %v125_v18 = vshll.u32 %v124_v16, 23 }
  0x55   :  { %v126_v19 = vor.u32 4788187, %v125_v18  ;;  %v129_v20 = vcvt.s32.f32 %v122_v17 }
  0x57   :  { %v127_v21 = vand.u32 2147483647, %v126_v19 }
  0x59   :  { %v130_v23 = vmul.f32 %v129_v20, %v127_v21 }
  0x5b   :  { %v131_v24 = vxor.u32 2147483648, %v130_v23 }
  0x5d   :  { %v132_v26 = vsel %vm49_vm7, %v131_v24, %v130_v23 }
  0x5e   :  { %v135_v27 = vsel %vm48_vm8, %v268_v9, %v132_v26 }
  0x5f   :  { %186 = vcosq.f32 %v135_v27 }
  0x60   :  { %188 = vsinq.f32 %v135_v27 }
  0x69   :  { %v187_v31 = vpop.eup %186 }
  0x6a   :  { %v189_v32 = vpop.eup %188  ;;  %v147_v33 = vxor.u32 2147483648, %v187_v31 }
  0x6b   :  { %v144_v34 = vxor.u32 2147483648, %v189_v32 }
  0x6c   :  { %v148_v12 = vsel %vm146_vm9, %v147_v33, %v189_v32 }
  0x6d   :  { %v145_v35 = vsel %vm143_vm10, %v187_v31, %v144_v34 }
  0x6e   :  { %v149_v36 = vsel %vm142_vm11, %v145_v35, %v148_v12 }
  0x6f   :  { %v150_v37 = vsel %vm139_vm12, nan, %v149_v36 }
  0x70   :  { %151 = vst [vmem:[#allocation5] sm:$0xff] %v150_v37 }
  0x71   :  { %223 = shalt.err (!%p220_p12)
}
  0x72   :  { %s224_s22 = scalar_lea.hbm %s302_s1, 128 }
  0x73   :  { %p225_p13 = scmp.ne.s32.totalorder %s302_s1, %s224_s22  ;;  %p228_p0 = scmp.lt.u32.totalorder %s224_s22, %s302_s1 }
  0x75   :  { %p230_p1 = pnand %p228_p0, %p225_p13 }
  0x77   :  { %233 = shalt.err (!%p230_p1)
}
  0x78   :  { %161 = dma.vmem_to_hbm [thread:$0]  %s159_s18, 128, %s302_s1, [#allocation4]  }
  0x79   :  { %236 = dma.done.wait [#allocation4], 128  }
  0x7a   :  { %237 = vsyncadd [#allocation4], 4294967168 }
  0x7b   :  { %165 = vsyncpa [#allocation3], 1 }
  0x7c   :  { %166 = vsyncpa [#allocation4], 1 }

</bundles_post_ra>
